<compile_context>
chip_gen: v7x
topology: tpu7x:2x2x1
jax: 0.10.0
libtpu: 0.0.40
codegen_flags: <defaults>
</compile_context>

<pallas_src>
import functools
import math

import jax
import jax.numpy as jnp
from jax import lax
from jax.experimental import pallas as pl
from jax.experimental.pallas import tpu as pltpu


_LANE = 128
_MIB = 1024 * 1024


def _round_up(x: int, m: int) -> int:
    return -(-x // m) * m


def _cdiv(a: int, b: int) -> int:
    return -(-a // b)


def _sublane_multiple(dtype) -> int:
    # 8 for 4-byte dtypes, 16 for bf16/fp16, 32 for int8/fp8.
    itemsize = jnp.dtype(dtype).itemsize
    return max(8, 32 // max(itemsize, 1))


def _min_fill(dtype):
    """Identity element of max() for `dtype` (used only to mask padded rows)."""
    dtype = jnp.dtype(dtype)
    if dtype == jnp.bool_:
        return False
    if jnp.issubdtype(dtype, jnp.floating):
        return -jnp.inf
    return int(jnp.iinfo(dtype).min)


def _budgets():
    """Generation-aware (per-block byte budget, vmem_limit cap)."""
    cap = 64 * _MIB                          # conservative default (v7x)
    try:
        cap = int(getattr(pltpu.get_tpu_info(), "vmem_capacity_bytes", cap))
    except Exception:
        pass
    if cap >= 96 * _MIB:                     # v5e / v6e: 128 MiB physical VMEM
        return 16 * _MIB, 96 * _MIB
    return 10 * _MIB, 48 * _MIB              # v7x: 64 MiB physical VMEM per TC


def _densify_factor(S: int, H: int) -> int:
    """Largest k <= 128//H that divides S (fold k S-rows into the lane axis)."""
    if H >= _LANE:
        return 1
    for k in range(_LANE // H, 1, -1):
        if S % k == 0:
            return k
    return 1


# ---------------------------------------------------------------------------
# Path 1: reduce the middle axis of a (B, S, H) view  (any dim != last axis).
# ---------------------------------------------------------------------------
def _max_mid_kernel(x_ref, o_ref, *, rem, needs_mask, fill):
    s = pl.program_id(2)                      # reduction axis (last grid dim)
    ns = pl.num_programs(2)

    def fold(tile_max):
        @pl.when(s == 0)
        def _():                              # init from the first tile
            o_ref[...] = tile_max

        @pl.when(s > 0)
        def _():                              # fold into resident accumulator
            o_ref[...] = jnp.maximum(o_ref[...], tile_max)

    if needs_mask:
        # Mask only on the LAST reduction step (ragged tail of S).
        @pl.when(s < ns - 1)
        def _():
            fold(jnp.max(x_ref[...], axis=1))

        @pl.when(s == ns - 1)
        def _():
            x = x_ref[...]
            row = lax.broadcasted_iota(jnp.int32, x.shape, 1)
            x = jnp.where(row < rem, x, jnp.array(fill, dtype=x.dtype))
            fold(jnp.max(x, axis=1))
    else:
        fold(jnp.max(x_ref[...], axis=1))


def _max_pool_mid(x_bsh: jax.Array, *, block_bytes: int, vmem_cap: int) -> jax.Array:
    B, S, H = x_bsh.shape
    dtype = x_bsh.dtype
    itemsize = jnp.dtype(dtype).itemsize
    sub = _sublane_multiple(dtype)

    h_pad = _round_up(H, _LANE)

    # tile_h: full H if at least `sub` streaming rows fit, else a lane-multiple chunk.
    if h_pad * sub * itemsize <= block_bytes:
        tile_h = H
    else:
        tile_h = max(_LANE, ((block_bytes // (sub * itemsize)) // _LANE) * _LANE)
    th_pad = _round_up(min(tile_h, H), _LANE)

    # tile_b / tile_s under the byte budget (stream the reduction axis).
    budget_rows = max(1, block_bytes // (th_pad * itemsize))   # (b x s) rows/block
    tile_b = B if B <= sub else sub
    rows = max(1, budget_rows // tile_b)
    if rows >= S or S <= sub:
        tile_s = S
        grow = budget_rows // _round_up(S, sub)
        if grow >= B:
            tile_b = B
        elif grow > tile_b:
            tile_b = max(sub, (grow // sub) * sub)
    else:
        tile_s = max(sub, (rows // sub) * sub)

    grid_b = _cdiv(B, tile_b)
    grid_h = _cdiv(H, tile_h)
    grid_s = _cdiv(S, tile_s)

    # Guarantee >= 2 blocks on a parallel axis when possible (v7x dual-TC).
    if grid_b * grid_h < 2:
        if h_pad >= 2 * _LANE:
            tile_h = _round_up(_cdiv(H, 2), _LANE)
            th_pad = _round_up(min(tile_h, H), _LANE)
            grid_h = _cdiv(H, tile_h)
        elif B > sub:
            tile_b = max(sub, _round_up(_cdiv(B, 2), sub))
            grid_b = _cdiv(B, tile_b)

    needs_mask = (S % tile_s) != 0
    rem = S - (grid_s - 1) * tile_s            # valid rows in the last S tile

    in_block = tile_b * _round_up(min(tile_s, S), sub) * th_pad * itemsize
    out_block = _round_up(tile_b, sub) * th_pad * itemsize
    vmem_bytes = int(min(vmem_cap,
                         max(2 * in_block + 2 * out_block + 4 * _MIB, 32 * _MIB)))

    kernel = functools.partial(_max_mid_kernel, rem=rem,
                               needs_mask=needs_mask, fill=_min_fill(dtype))

    return pl.pallas_call(
        kernel,
        out_shape=jax.ShapeDtypeStruct((B, H), dtype),
        grid_spec=pltpu.PrefetchScalarGridSpec(
            num_scalar_prefetch=0,
            grid=(grid_b, grid_h, grid_s),                       # reduction last
            in_specs=[pl.BlockSpec((tile_b, tile_s, tile_h),
                                   lambda b, h, s: (b, s, h))],
            out_specs=pl.BlockSpec((tile_b, tile_h), lambda b, h, s: (b, h)),
        ),
        compiler_params=pltpu.CompilerParams(
            dimension_semantics=("parallel", "parallel", "arbitrary"),
            vmem_limit_bytes=vmem_bytes,
        ),
        cost_estimate=pl.CostEstimate(
            flops=B * S * H,
            transcendentals=0,
            bytes_accessed=(B * S * H + B * H) * itemsize,
        ),
    )(x_bsh)


# ---------------------------------------------------------------------------
# Path 2: reduce the last (lane) axis of a (B, S) view  (dim == ndim - 1).
# ---------------------------------------------------------------------------
def _max_last_kernel(x_ref, o_ref, *, rem, needs_mask, fill):
    s = pl.program_id(1)
    ns = pl.num_programs(1)

    def fold(tile_max):
        @pl.when(s == 0)
        def _():
            o_ref[...] = tile_max

        @pl.when(s > 0)
        def _():
            o_ref[...] = jnp.maximum(o_ref[...], tile_max)

    if needs_mask:
        @pl.when(s < ns - 1)
        def _():
            fold(jnp.max(x_ref[...], axis=1, keepdims=True))

        @pl.when(s == ns - 1)
        def _():
            x = x_ref[...]
            col = lax.broadcasted_iota(jnp.int32, x.shape, 1)
            x = jnp.where(col < rem, x, jnp.array(fill, dtype=x.dtype))
            fold(jnp.max(x, axis=1, keepdims=True))
    else:
        fold(jnp.max(x_ref[...], axis=1, keepdims=True))


def _max_pool_last(x_bs: jax.Array, *, block_bytes: int, vmem_cap: int) -> jax.Array:
    B, S = x_bs.shape
    dtype = x_bs.dtype
    itemsize = jnp.dtype(dtype).itemsize
    sub = _sublane_multiple(dtype)

    # Lane axis is the reduced axis here: tile it in multiples of 128.
    full_row_bytes = _round_up(S, _LANE) * itemsize
    if full_row_bytes * sub <= block_bytes:
        tile_s = S                                        # whole row per block
    else:
        tile_s = max(_LANE,
                     ((block_bytes // (sub * itemsize)) // _LANE) * _LANE)
    ts_pad = _round_up(min(tile_s, S), _LANE)

    row_bytes = ts_pad * itemsize
    b_rows = max(sub, ((block_bytes // row_bytes) // sub) * sub)
    tile_b = B if B <= b_rows else b_rows

    grid_b = _cdiv(B, tile_b)
    # Guarantee >= 2 batch blocks when possible (v7x dual-TC).
    if grid_b < 2 and B > sub:
        tile_b = max(sub, _round_up(_cdiv(B, 2), sub))
        grid_b = _cdiv(B, tile_b)

    grid_s = _cdiv(S, tile_s)
    needs_mask = (S % tile_s) != 0
    rem = S - (grid_s - 1) * tile_s

    in_block = _round_up(tile_b, sub) * ts_pad * itemsize
    out_block = _round_up(tile_b, sub) * _LANE * itemsize
    vmem_bytes = int(min(vmem_cap,
                         max(2 * in_block + 2 * out_block + 4 * _MIB, 32 * _MIB)))

    kernel = functools.partial(_max_last_kernel, rem=rem,
                               needs_mask=needs_mask, fill=_min_fill(dtype))

    return pl.pallas_call(
        kernel,
        out_shape=jax.ShapeDtypeStruct((B, 1), dtype),
        grid_spec=pltpu.PrefetchScalarGridSpec(
            num_scalar_prefetch=0,
            grid=(grid_b, grid_s),
            in_specs=[pl.BlockSpec((tile_b, tile_s), lambda b, s: (b, s))],
            out_specs=pl.BlockSpec((tile_b, 1), lambda b, s: (b, 0)),
        ),
        compiler_params=pltpu.CompilerParams(
            dimension_semantics=("parallel", "arbitrary"),
            vmem_limit_bytes=vmem_bytes,
        ),
        cost_estimate=pl.CostEstimate(
            flops=B * S,
            transcendentals=0,
            bytes_accessed=(B * S + B) * itemsize,
        ),
    )(x_bs)


# ---------------------------------------------------------------------------
# Public wrapper — equivalent of MaxPoolingLayer(dim).forward(x) (values only).
# ---------------------------------------------------------------------------
def max_pooling_layer(x: jax.Array, dim: int, *,
                      block_bytes: int | None = None) -> jax.Array:
    """Max-reduce `x` over axis `dim` (torch.max(x, dim).values).

    No transposes: leading axes fold into B and trailing axes into H via
    free reshapes; dim == last axis uses a dedicated lane-reduction kernel.
    `block_bytes` overrides the generation-aware per-block VMEM budget
    (exposed for testing).
    """
    # TODO(synk): the module's debug logging and the argmax indices returned
    # by torch.max (discarded by the module) are intentionally not produced.
    ndim = x.ndim
    dim = dim % ndim
    shape = x.shape
    out_shape = shape[:dim] + shape[dim + 1:]

    default_block, vmem_cap = _budgets()
    if block_bytes is None:
        block_bytes = default_block

    if dim == ndim - 1:
        B = math.prod(shape[:-1]) if ndim > 1 else 1
        pooled = _max_pool_last(x.reshape(B, shape[-1]),
                                block_bytes=block_bytes, vmem_cap=vmem_cap)
        return pooled.reshape(out_shape)

    B = math.prod(shape[:dim]) if dim > 0 else 1
    S = shape[dim]
    H = math.prod(shape[dim + 1:])

    k = _densify_factor(S, H)
    if k > 1:
        # Lane-densify: fold k consecutive S rows into the lane axis (free
        # reshape), stream the big reduction in Pallas, and finish with a tiny
        # (B, k, H) fold outside the kernel.
        pooled = _max_pool_mid(x.reshape(B, S // k, k * H),
                               block_bytes=block_bytes, vmem_cap=vmem_cap)
        pooled = jnp.max(pooled.reshape(B, k, H), axis=1)
    else:
        pooled = _max_pool_mid(x.reshape(B, S, H),
                               block_bytes=block_bytes, vmem_cap=vmem_cap)
    return pooled.reshape(out_shape)


if __name__ == "__main__":
    key = jax.random.PRNGKey(0)
    ks = jax.random.split(key, 7)

    checks = []

    # 1) Canonical agent usage: (batch, seq, hidden), pool over seq (dim=1).
    #    H=32 < 128 -> lane-densified path (k=4).
    x1 = jax.random.normal(ks[0], (2, 16, 32), dtype=jnp.float32)
    checks.append((max_pooling_layer(x1, dim=1), jnp.max(x1, axis=1)))

    # 2) Multi-block reduction at the default (generation-aware) tiling.
    x2 = jax.random.normal(ks[1], (8, 1024, 256), dtype=jnp.float32)
    checks.append((max_pooling_layer(x2, dim=1), jnp.max(x2, axis=1)))

    # 3) Non-divisible reduction axis + tiny forced blocks (last-step masking).
    x3 = jax.random.normal(ks[2], (4, 100, 32), dtype=jnp.float32)
    checks.append((max_pooling_layer(x3, dim=1, block_bytes=4096),
                   jnp.max(x3, axis=1)))

    # 4) Pool over the last axis (lane-reduction path, ragged lane tiles).
    x4 = jax.random.normal(ks[3], (4, 4, 300), dtype=jnp.float32)
    checks.append((max_pooling_layer(x4, dim=-1, block_bytes=4096),
                   jnp.max(x4, axis=-1)))

    # 5) Integer dtype + leading-axis pool (dim=0): no -inf init needed.
    x5 = jax.random.randint(ks[4], (7, 3, 33), minval=-1000, maxval=1000,
                            dtype=jnp.int32)
    checks.append((max_pooling_layer(x5, dim=0), jnp.max(x5, axis=0)))

    # 6) Wide-H with a small budget: exercises the tiled/parallel H grid axis
    #    with a ragged last H block.
    x6 = jax.random.normal(ks[5], (2, 32, 1000), dtype=jnp.float32)
    checks.append((max_pooling_layer(x6, dim=1, block_bytes=16384),
                   jnp.max(x6, axis=1)))

    # 7) bf16 + ragged batch/reduction tiles + the dual-TC H split (H=160).
    x7 = jax.random.normal(ks[6], (13, 37, 160), dtype=jnp.bfloat16)
    checks.append((max_pooling_layer(x7, dim=1, block_bytes=8192),
                   jnp.max(x7, axis=1)))

    for i, (got, ref) in enumerate(checks):
        got = jax.block_until_ready(got)
        assert got.shape == ref.shape, (i, got.shape, ref.shape)
        assert got.dtype == ref.dtype, (i, got.dtype, ref.dtype)
        assert bool(jnp.array_equal(got, ref)), f"mismatch vs reference in case {i}"

    print("KERNEL_OK")
</pallas_src>

<mosaic_0001>
module attributes {stable_mosaic.version = 11 : i64} {
  func.func @_max_mid_kernel(%arg0: i32, %arg1: i32, %arg2: i32, %arg3: memref<2x4x128xf32, #tpu.memory_space<vmem>>, %arg4: memref<2x128xf32, #tpu.memory_space<vmem>>) attributes {dimension_semantics = [#tpu.dimension_semantics<parallel>, #tpu.dimension_semantics<parallel>, #tpu.dimension_semantics<arbitrary>], iteration_bounds = array<i64: 1, 1, 1>, scalar_prefetch = 0 : i64, scratch_operands = 0 : i64, tpu.core_type = #tpu.core_type<tc>, window_params = [{transform_indices = @transform_0, window_bounds = array<i64: 2, 4, 128>}, {transform_indices = @transform_1, window_bounds = array<i64: 2, 128>}]} {
    %c0 = arith.constant 0 : index
    %c0_0 = arith.constant 0 : index
    %c0_1 = arith.constant 0 : index
    %0 = vector.load %arg3[%c0, %c0_0, %c0_1] : memref<2x4x128xf32, #tpu.memory_space<vmem>>, vector<2x4x128xf32>
    %cst = arith.constant dense<0xFF800000> : vector<2x128xf32>
    %1 = vector.multi_reduction <maximumf>, %0, %cst [1] : vector<2x4x128xf32> to vector<2x128xf32>
    %c0_i32 = arith.constant 0 : i32
    %2 = arith.cmpi eq, %arg2, %c0_i32 : i32
    %3 = arith.extui %2 : i1 to i32
    %c0_i32_2 = arith.constant 0 : i32
    %4 = arith.cmpi ne, %3, %c0_i32_2 : i32
    scf.if %4 {
      %c0_5 = arith.constant 0 : index
      %c0_6 = arith.constant 0 : index
      %8 = vector.load %arg4[%c0_5, %c0_6] : memref<2x128xf32, #tpu.memory_space<vmem>>, vector<2x128xf32>
      tpu.vector_store %arg4[%c0_5, %c0_6], %1 {strides = array<i32>} : memref<2x128xf32, #tpu.memory_space<vmem>>, vector<2x128xf32>,
    } else {
    }
    %c0_i32_3 = arith.constant 0 : i32
    %5 = arith.cmpi sgt, %arg2, %c0_i32_3 : i32
    %6 = arith.extui %5 : i1 to i32
    %c0_i32_4 = arith.constant 0 : i32
    %7 = arith.cmpi ne, %6, %c0_i32_4 : i32
    scf.if %7 {
      %c0_5 = arith.constant 0 : index
      %c0_6 = arith.constant 0 : index
      %8 = vector.load %arg4[%c0_5, %c0_6] : memref<2x128xf32, #tpu.memory_space<vmem>>, vector<2x128xf32>
      %9 = arith.maximumf %8, %1 : vector<2x128xf32>
      %c0_7 = arith.constant 0 : index
      %c0_8 = arith.constant 0 : index
      %10 = vector.load %arg4[%c0_7, %c0_8] : memref<2x128xf32, #tpu.memory_space<vmem>>, vector<2x128xf32>
      tpu.vector_store %arg4[%c0_7, %c0_8], %9 {strides = array<i32>} : memref<2x128xf32, #tpu.memory_space<vmem>>, vector<2x128xf32>,
    } else {
    }
    return
  }
  func.func @transform_0(%arg0: i32, %arg1: i32, %arg2: i32) -> (i32, i32, i32) {
    %c0_i32 = arith.constant 0 : i32
    return %arg0, %arg2, %arg1 : i32, i32, i32
  }
  func.func @transform_1(%arg0: i32, %arg1: i32, %arg2: i32) -> (i32, i32) {
    %c0_i32 = arith.constant 0 : i32
    return %arg0, %arg1 : i32, i32
  }
}

</mosaic_0001>

<bundles_post_ra>
// kernel: tpu_custom_call.1
= control target key start
LH: loop header
LB: loop body
LE: loop exit
PB: predicated region body
PF: predicated region fallthrough
CT: control target
= control target key end

     0   :  { %6 = vsyncpa [#allocation3], 0  ;;  %s167_s0 = inlined_call_operand.hbm [shape: f32[2,4,128], index: 0, kind: input, shape index: {}]   ;;  %s168_s1 = inlined_call_operand.hbm [shape: f32[2,128], index: 1, kind: output, shape index: {}]  }
   0x1   :  { %7 = vsyncpa [#allocation4], 0  ;;  %s129_s6 = smov [#allocation2]   ;;  %s81_s10 = scalar_lea.hbm %s167_s0, 128 }
   0x2   :  { %s13_s7 = sshll.u32 %s129_s6, 4  ;;  %p82_p0 = scmp.ne.s32.totalorder %s167_s0, %s81_s10  ;;  %s14_s7 = int_to_ptr.vmem [resolvable:$true] %s13_s7 }
   0x3   :  { %p85_p1 = scmp.lt.u32.totalorder %s81_s10, %s167_s0 }
   0x5   :  { %p87_p2 = pnand %p85_p1, %p82_p0 }
   0x7   :  { %90 = shalt.err (!%p87_p2)
}
   0x8   :  { %s91_s15 = scalar_lea.vmem %s14_s7, 128  ;;  %p96_p4 = scmp.lt.s32.totalorder %s14_s7, %s14_s7 }
   0x9   :  { %p92_p3 = scmp.ne.s32.totalorder %s14_s7, %s91_s15  ;;  %p97_p5 = scmp.lt.s32.totalorder %s91_s15, %s91_s15 }
   0xb   :  { %p98_p6 = por %p97_p5, %p96_p4 }
   0xd   :  { %p99_p7 = pnand %p98_p6, %p92_p3 }
   0xf   :  { %102 = shalt.err (!%p99_p7)
}
  0x10   :  { %s130_s16 = smov 64   ;;  %s131_s17 = smov 4  }
  0x11   :  { %19 = dma.hbm_to_vmem [thread:$0]  %s167_s0, 128, %s14_s7, [#allocation3], %s130_s16, %s130_s16, %s131_s17  }
  0x12   :  { %125 = dma.done.wait [#allocation3], 128  }
  0x13   :  { %126 = vsyncadd [#allocation3], 4294967168  ;;  %vm25_vm0 = vcmask 1043456   ;;  %v23_v0 = vld [vmem:[#allocation2] sm:$0xf]  ;;  %s132_s20 = smov [#allocation5]  }
  0x14   :  { %v24_v1 = vld [vmem:[#allocation2 + $0x4] sm:$0xf]  ;;  %v26_v2 = vsel %vm25_vm0, %v23_v0, -inf  ;;  %s68_s21 = sshll.u32 %s132_s20, 4  ;;  %vm46_vm1 = vcmask 1041409   ;;  %s69_s21 = int_to_ptr.vmem [resolvable:$true] %s68_s21 }
  0x15   :  { %v33_v3 = vsel %vm25_vm0, %v24_v1, -inf  ;;  %v27_v4 = vrot.slane %v26_v2, 4  ;;  %s103_s0 = scalar_lea.vmem %s69_s21, 32  ;;  %p108_p9 = scmp.lt.s32.totalorder %s69_s21, %s69_s21 }
  0x16   :  { %v34_v5 = vrot.slane %v33_v3, 4  ;;  %p104_p8 = scmp.ne.s32.totalorder %s69_s21, %s103_s0  ;;  %p109_p10 = scmp.lt.s32.totalorder %s103_s0, %s103_s0 }
  0x17   :  { %v28_v6 = vmax.f32 %v26_v2, %v27_v4 }
  0x18   :  { %v35_v7 = vmax.f32 %v33_v3, %v34_v5  ;;  %p110_p11 = por %p109_p10, %p108_p9 }
  0x19   :  { %v29_v8 = vrot.slane %v28_v6, 2 }
  0x1a   :  { %v36_v9 = vrot.slane %v35_v7, 2  ;;  %p111_p12 = pnand %p110_p11, %p104_p8 }
  0x1b   :  { %v30_v10 = vmax.f32 %v28_v6, %v29_v8 }
  0x1c   :  { %v37_v11 = vmax.f32 %v35_v7, %v36_v9 }
  0x1d   :  { %v31_v12 = vrot.slane %v30_v10, 1 }
  0x1e   :  { %v38_v13 = vrot.slane %v37_v11, 1 }
  0x1f   :  { %v32_v14 = vmax.f32 %v30_v10, %v31_v12 }
  0x20   :  { %v39_v15 = vmax.f32 %v37_v11, %v38_v13 }
  0x22   :  { %v47_v16 = vsel %vm46_vm1, %v39_v15, %v32_v14 }
  0x23   :  { %49 = vst [vmem:[#allocation5] sm:$0x3] %v47_v16 }
  0x24   :  { %114 = shalt.err (!%p111_p12)
}
  0x25   :  { %s115_s24 = scalar_lea.hbm %s168_s1, 32 }
  0x26   :  { %p116_p13 = scmp.ne.s32.totalorder %s168_s1, %s115_s24  ;;  %p119_p0 = scmp.lt.u32.totalorder %s115_s24, %s168_s1 }
  0x28   :  { %p121_p1 = pnand %p119_p0, %p116_p13 }
  0x2a   :  { %124 = shalt.err (!%p121_p1)
}
  0x2b   :  { %71 = dma.vmem_to_hbm [thread:$0]  %s69_s21, 32, %s168_s1, [#allocation4]  }
  0x2c   :  { %127 = dma.done.wait [#allocation4], 32  }
  0x2d   :  { %128 = vsyncadd [#allocation4], 4294967264 }
  0x2e   :  { %75 = vsyncpa [#allocation3], 1 }
  0x2f   :  { %76 = vsyncpa [#allocation4], 1 }

</bundles_post_ra>
